<compile_context>
chip_gen: v6e
topology: v6e:2x2x1
jax: 0.10.0
libtpu: 0.0.40
codegen_flags: <defaults>
</compile_context>

<pallas_src>
import numpy as np
import jax
import jax.numpy as jnp
from jax.experimental import pallas as pl
from jax.experimental.pallas import tpu as pltpu


def _round_up(x, m):
    return ((x + m - 1) // m) * m


def _pick_tile(extent, max_tile, multiple):
    """Largest tile <= max_tile that is a multiple of `multiple` and covers extent."""
    return min(max_tile, _round_up(extent, multiple))


# -----------------------------------------------------------------------------
# 1) Input normalization:  (img / 255 - mean[c]) / std[c]  ==  img*scale[c] + bias[c]
# -----------------------------------------------------------------------------
_IMAGENET_MEAN = np.array([0.485, 0.456, 0.406], np.float64)
_IMAGENET_STD = np.array([0.229, 0.224, 0.225], np.float64)


def normalize_images_pallas(images, max_hw_tile=32768, row_tile=8):
    """images: (b, T, 3, h, w) float32 raw pixel values in [0, 255]."""
    b, T, C, h, w = images.shape
    assert C == 3
    HW = h * w
    rows = b * T * C
    hw_tile = _pick_tile(HW, max_hw_tile, 128)

    # Sublane-dense view: (b*T*3, HW).  No padding — ragged blocks are masked.
    x = images.astype(jnp.float32).reshape(rows, HW)

    # Per-row FMA constants (row -> channel = row % 3), padded to a multiple of 8 rows
    # so the (row_tile, 1) blocks are always fully in-bounds.
    rows_p = _round_up(rows, row_tile)
    scale_c = (1.0 / (255.0 * _IMAGENET_STD)).astype(np.float32)
    bias_c = (-_IMAGENET_MEAN / _IMAGENET_STD).astype(np.float32)
    scale = np.zeros((rows_p, 1), np.float32)
    bias = np.zeros((rows_p, 1), np.float32)
    scale[:rows, 0] = np.tile(scale_c, b * T)
    bias[:rows, 0] = np.tile(bias_c, b * T)
    scale = jnp.asarray(scale)
    bias = jnp.asarray(bias)

    def kernel(scale_ref, bias_ref, x_ref, o_ref):
        # (row_tile, hw_tile) * (row_tile, 1) + (row_tile, 1) — single FMA per vreg
        o_ref[...] = x_ref[...] * scale_ref[...] + bias_ref[...]

    out = pl.pallas_call(
        kernel,
        out_shape=jax.ShapeDtypeStruct((rows, HW), jnp.float32),
        grid=(pl.cdiv(rows, row_tile), pl.cdiv(HW, hw_tile)),
        in_specs=[
            pl.BlockSpec((row_tile, 1), lambda r, p: (r, 0)),
            pl.BlockSpec((row_tile, 1), lambda r, p: (r, 0)),
            pl.BlockSpec((row_tile, hw_tile), lambda r, p: (r, p)),
        ],
        out_specs=pl.BlockSpec((row_tile, hw_tile), lambda r, p: (r, p)),
        compiler_params=pltpu.CompilerParams(
            dimension_semantics=("parallel", "parallel")),
    )(scale, bias, x)
    return out.reshape(b, T, C, h, w)


def _normalize_ref(images):
    mean = jnp.array([0.485, 0.456, 0.406], jnp.float32).reshape(1, 1, 3, 1, 1)
    std = jnp.array([0.229, 0.224, 0.225], jnp.float32).reshape(1, 1, 3, 1, 1)
    return (images / 255.0 - mean) / std


# -----------------------------------------------------------------------------
# 2) corr_mlp : Mlp(in=4*9*9=324, hidden=256, out=128), applied per-pixel
#    (self.corr_mlp(x.permute(0,2,3,1)).permute(0,3,1,2))
# -----------------------------------------------------------------------------
_SQRT_2_OVER_PI = 0.7978845608028654
_INV_SQRT2 = 0.7071067811865476


def _gelu_exact(x):
    # nn.GELU() default = exact erf-based GELU (f32 VALU polynomial)
    return 0.5 * x * (1.0 + jax.lax.erf(x * _INV_SQRT2))


def _gelu_tanh(x):
    # tanh approximation — jnp.tanh lands on the EUP slot (free vs. the VALU).
    return 0.5 * x * (1.0 + jnp.tanh(_SQRT_2_OVER_PI * (x + 0.044715 * (x * x * x))))


def corr_mlp_pallas(out_corrs, params, tile_m=2048, approximate_gelu=True):
    """out_corrs: (N, 324, H, W) NCHW -> (N, 128, H, W).

    bf16 MXU matmuls with f32 accumulation; bias/activation in f32.
    approximate_gelu=True uses the tanh GELU (EUP); False = exact PyTorch erf GELU.
    """
    N, Cin, H, W = out_corrs.shape
    w1, b1, w2, b2 = params
    hidden = w1.shape[1]
    Cout = w2.shape[1]
    Cinp = _round_up(Cin, 128)          # 324 -> 384 (clean MXU K tiles)

    # TODO(synk): keep correlation features channels-last upstream so the
    # NCHW->NHWC transpose (a full HBM pass over the 324-channel activation)
    # disappears entirely.
    x = jnp.transpose(out_corrs, (0, 2, 3, 1)).reshape(N * H * W, Cin)
    M = x.shape[0]
    tile_m = min(tile_m, _round_up(M, 128))
    # Only the K dim is padded (fused with the bf16 cast); the M dim is handled
    # as a ragged last grid block by Pallas (masked writes).
    x = jnp.pad(x, ((0, 0), (0, Cinp - Cin))).astype(jnp.bfloat16)
    w1p = jnp.pad(w1, ((0, Cinp - Cin), (0, 0))).astype(jnp.bfloat16)
    w2b = w2.astype(jnp.bfloat16)

    act = _gelu_tanh if approximate_gelu else _gelu_exact

    def kernel(x_ref, w1_ref, b1_ref, w2_ref, b2_ref, o_ref):
        h1 = jnp.dot(x_ref[...], w1_ref[...],
                     preferred_element_type=jnp.float32) + b1_ref[...]
        h1 = act(h1)
        y = jnp.dot(h1.astype(jnp.bfloat16), w2_ref[...],
                    preferred_element_type=jnp.float32) + b2_ref[...]
        o_ref[...] = y

    y = pl.pallas_call(
        kernel,
        out_shape=jax.ShapeDtypeStruct((M, Cout), jnp.float32),
        grid=(pl.cdiv(M, tile_m),),
        in_specs=[
            pl.BlockSpec((tile_m, Cinp), lambda i: (i, 0)),
            pl.BlockSpec((Cinp, hidden), lambda i: (0, 0)),
            pl.BlockSpec((1, hidden), lambda i: (0, 0)),
            pl.BlockSpec((hidden, Cout), lambda i: (0, 0)),
            pl.BlockSpec((1, Cout), lambda i: (0, 0)),
        ],
        out_specs=pl.BlockSpec((tile_m, Cout), lambda i: (i, 0)),
        compiler_params=pltpu.CompilerParams(
            dimension_semantics=("parallel",)),
    )(x, w1p, b1, w2b, b2)

    y = y.reshape(N, H, W, Cout)
    return jnp.transpose(y, (0, 3, 1, 2))


def _corr_mlp_ref_f32(out_corrs, params):
    """Exact PyTorch semantics (f32, erf GELU) — loose sanity reference."""
    w1, b1, w2, b2 = params
    x = jnp.transpose(out_corrs, (0, 2, 3, 1))
    h1 = _gelu_exact(x @ w1 + b1[0])
    y = h1 @ w2 + b2[0]
    return jnp.transpose(y, (0, 3, 1, 2))


def _corr_mlp_ref_bf16(out_corrs, params, approximate_gelu=True):
    """Reference mirroring the kernel's bf16 MXU inputs / f32 accumulation / GELU."""
    w1, b1, w2, b2 = params
    N, Cin, H, W = out_corrs.shape
    act = _gelu_tanh if approximate_gelu else _gelu_exact
    x = jnp.transpose(out_corrs, (0, 2, 3, 1)).reshape(-1, Cin).astype(jnp.bfloat16)
    h1 = jnp.dot(x, w1.astype(jnp.bfloat16),
                 preferred_element_type=jnp.float32) + b1[0]
    h1 = act(h1)
    y = jnp.dot(h1.astype(jnp.bfloat16), w2.astype(jnp.bfloat16),
                preferred_element_type=jnp.float32) + b2[0]
    y = y.reshape(N, H, W, -1)
    return jnp.transpose(y, (0, 3, 1, 2))


# -----------------------------------------------------------------------------
# 3) convex_upsample_3D : softmax over 27 (3x3x3) neighbors, convex-combine the
#    4x-scaled flow, upsample (H, W) -> (4H, 4W).
# -----------------------------------------------------------------------------
def _gather_3x3x3(flow5, rate):
    """flow5: (b,2,T,H,W) -> (b,2,27,T,H,W) zero-padded neighbors of rate*flow (ref path)."""
    b, C, T, H, W = flow5.shape
    fp = jnp.pad(rate * flow5, ((0, 0), (0, 0), (1, 1), (1, 1), (1, 1)))
    nbrs = [fp[:, :, kt:kt + T, kh:kh + H, kw:kw + W]
            for kt in range(3) for kh in range(3) for kw in range(3)]
    return jnp.stack(nbrs, axis=2)


def _gather_neighbors_nk(flow, b, T, rate):
    """flow: (b*T,2,H,W) -> (b*T, 27, 2, H*W) zero-padded 3x3x3 neighbors of rate*flow.

    Layout puts the 27-dim in front of the channel dim so the per-k slab read inside
    the kernel loop is a leading-dim offset (no cross-sublane extraction).
    """
    N, C, H, W = flow.shape
    f = (rate * flow).reshape(b, T, C, H, W)
    fp = jnp.pad(f, ((0, 0), (1, 1), (0, 0), (1, 1), (1, 1)))
    nbrs = [fp[:, kt:kt + T, :, kh:kh + H, kw:kw + W]
            for kt in range(3) for kh in range(3) for kw in range(3)]
    nbr = jnp.stack(nbrs, axis=2)                       # (b, T, 27, 2, H, W)
    return nbr.reshape(b * T, 27, C, H * W)


def convex_upsample_3d_pallas(flow, mask, b, T, rate=4, max_hw_tile=2048):
    """flow: (b*T, 2, H, W), mask: (b*T, 27*rate*rate, H, W) -> (b*T, 2, rate*H, rate*W)."""
    N, C, H, W = flow.shape
    assert C == 2 and N == b * T
    R2 = rate * rate
    HW = H * W
    # hw_tile=2048 -> ~8.5 MiB double-buffered block set: safe under the scoped-VMEM
    # defaults on v5e (16 MiB), v6e (32 MiB) and v7x (32 MiB of 64 MiB physical).
    hw_tile = _pick_tile(HW, max_hw_tile, 128)

    # mask channel c = k*R2 + r1*rate + r2 decomposes contiguously:
    # the softmax/group split is a plain reshape (no transpose, no HBM pass).
    mask_k = mask.reshape(b * T, 27, R2, HW)
    nbr_k = _gather_neighbors_nk(flow, b, T, rate)       # (b*T, 27, 2, HW)

    def kernel(mask_ref, nbr_ref, o_ref):
        m = mask_ref[0]                                  # (27, R2, hw)
        nb = nbr_ref[0]                                  # (27, 2, hw)
        mx = jnp.max(m, axis=0)                          # (R2, hw)
        # exp fused into the 27-way accumulation: live data stays ~1x output size.
        e = jnp.exp(m[0] - mx)
        den = e
        acc = e[None, :, :] * nb[0][:, None, :]          # (2, R2, hw)
        for k in range(1, 27):
            e = jnp.exp(m[k] - mx)
            den = den + e
            acc = acc + e[None, :, :] * nb[k][:, None, :]
        # exact reciprocal: applied once per tile on (R2, hw) — negligible cost,
        # keeps full softmax precision in the output flow values.
        o_ref[...] = (acc * (1.0 / den)[None, :, :])[None]

    out = pl.pallas_call(
        kernel,
        out_shape=jax.ShapeDtypeStruct((b * T, 2, R2, HW), jnp.float32),
        grid=(b * T, pl.cdiv(HW, hw_tile)),
        in_specs=[
            pl.BlockSpec((1, 27, R2, hw_tile), lambda n, p: (n, 0, 0, p)),
            pl.BlockSpec((1, 27, 2, hw_tile), lambda n, p: (n, 0, 0, p)),
        ],
        out_specs=pl.BlockSpec((1, 2, R2, hw_tile), lambda n, p: (n, 0, 0, p)),
        compiler_params=pltpu.CompilerParams(
            dimension_semantics=("parallel", "parallel")),
    )(mask_k, nbr_k)

    # pixel shuffle: out[n, c, r1, r2, h, w] -> result[n, c, h*rate+r1, w*rate+r2]
    # TODO(synk): a 2D-tiled kernel storing (rate*H_tile, rate*W_tile) blocks directly
    # would remove this remaining full-HBM transpose of the upsampled flow.
    out = out.reshape(b * T, 2, rate, rate, H, W)
    out = jnp.transpose(out, (0, 1, 4, 2, 5, 3))
    return out.reshape(b * T, 2, rate * H, rate * W)


def _convex_upsample_3d_ref(flow, mask, b, T, rate=4):
    N, _, H, W = flow.shape
    R2 = rate * rate
    flow5 = jnp.transpose(flow.reshape(b, T, 2, H, W), (0, 2, 1, 3, 4))
    mask5 = jnp.transpose(mask.reshape(b, T, 27 * R2, H, W), (0, 2, 1, 3, 4))
    m = mask5.reshape(b, 1, 27, 1, rate, rate, T, H, W)
    m = jax.nn.softmax(m, axis=2)
    up = _gather_3x3x3(flow5, rate).reshape(b, 2, 27, 1, 1, 1, T, H, W)
    out = jnp.sum(m * up, axis=2)                        # (b,2,1,rate,rate,T,H,W)
    out = jnp.transpose(out, (0, 1, 5, 2, 6, 3, 7, 4))    # (b,2,T,1,H,rate,W,rate)
    out = out.reshape(b, 2, T, rate * H, rate * W)
    return jnp.transpose(out, (0, 2, 1, 3, 4)).reshape(b * T, 2, rate * H, rate * W)


# -----------------------------------------------------------------------------
# 4) zero_init
# -----------------------------------------------------------------------------
def zero_init(fmap):
    N, C, H, W = fmap.shape
    return jnp.zeros((N, 2, H, W), jnp.float32)


# -----------------------------------------------------------------------------
# Deterministic parameter construction for corr_mlp (matches nn.Linear shapes)
# -----------------------------------------------------------------------------
def make_corr_mlp_params(key):
    Cin, Chid, Cout = 4 * 9 * 9, 256, 128                # Mlp(324, 256, 128)
    k1, k2, k3, k4 = jax.random.split(key, 4)
    lim1 = 1.0 / np.sqrt(Cin)
    lim2 = 1.0 / np.sqrt(Chid)
    w1 = jax.random.uniform(k1, (Cin, Chid), jnp.float32, -lim1, lim1)
    b1 = jax.random.uniform(k2, (1, Chid), jnp.float32, -lim1, lim1)
    w2 = jax.random.uniform(k3, (Chid, Cout), jnp.float32, -lim2, lim2)
    b2 = jax.random.uniform(k4, (1, Cout), jnp.float32, -lim2, lim2)
    return (w1, b1, w2, b2)


if __name__ == "__main__":
    key = jax.random.PRNGKey(0)
    kp, k1, k2, k3, k4 = jax.random.split(key, 5)

    # small shapes consistent with the module: (b, T, 3, h, w), feature stride 4
    b, T, h, w = 1, 2, 32, 32
    H, W = h // 4, w // 4
    rate = 4

    images1 = jax.random.uniform(k1, (b, T, 3, h, w), jnp.float32, 0.0, 255.0)
    out_corrs = jax.random.normal(k2, (b * T, 4 * 9 * 9, H, W), jnp.float32)  # AAPC output shape
    up_mask = jax.random.normal(k3, (b * T, 27 * rate * rate, H, W), jnp.float32)
    flow = jax.random.normal(k4, (b * T, 2, H, W), jnp.float32)

    params = make_corr_mlp_params(kp)

    # --- run the Pallas kernels ---
    norm1 = normalize_images_pallas(images1)
    corr_feat = corr_mlp_pallas(out_corrs, params)
    flow0 = zero_init(out_corrs)
    up_flow = convex_upsample_3d_pallas(flow, up_mask, b, T, rate=rate)
    jax.block_until_ready((norm1, corr_feat, flow0, up_flow))

    # --- shape checks (match PyTorch semantics) ---
    assert norm1.shape == (b, T, 3, h, w)
    assert corr_feat.shape == (b * T, 128, H, W)
    assert flow0.shape == (b * T, 2, H, W)
    assert up_flow.shape == (b * T, 2, rate * H, rate * W)

    # --- correctness vs pure-JAX references ---
    np.testing.assert_allclose(np.asarray(norm1), np.asarray(_normalize_ref(images1)),
                               rtol=1e-5, atol=1e-5)
    # bf16 + tanh-GELU matched reference (same dtype/accumulation/activation) -> tight
    np.testing.assert_allclose(np.asarray(corr_feat),
                               np.asarray(_corr_mlp_ref_bf16(out_corrs, params,
                                                             approximate_gelu=True)),
                               rtol=5e-3, atol=5e-3)
    # f32 exact-erf reference (PyTorch semantics) -> loose sanity check: bounded
    # bf16-MXU + tanh-GELU deviation
    np.testing.assert_allclose(np.asarray(corr_feat),
                               np.asarray(_corr_mlp_ref_f32(out_corrs, params)),
                               rtol=5e-2, atol=5e-2)
    # exact softmax reciprocal now -> tight tolerance
    np.testing.assert_allclose(np.asarray(up_flow),
                               np.asarray(_convex_upsample_3d_ref(flow, up_mask, b, T, rate)),
                               rtol=1e-4, atol=1e-4)

    print("KERNEL_OK")
</pallas_src>

<mosaic_0001>
module attributes {stable_mosaic.version = 11 : i64} {
  func.func @kernel(%arg0: i32, %arg1: i32, %arg2: memref<8x1xf32, #tpu.memory_space<vmem>>, %arg3: memref<8x1xf32, #tpu.memory_space<vmem>>, %arg4: memref<8x1024xf32, #tpu.memory_space<vmem>>, %arg5: memref<8x1024xf32, #tpu.memory_space<vmem>>) attributes {dimension_semantics = [#tpu.dimension_semantics<parallel>, #tpu.dimension_semantics<parallel>], iteration_bounds = array<i64: 1, 1>, scalar_prefetch = 0 : i64, scratch_operands = 0 : i64, tpu.core_type = #tpu.core_type<tc>, window_params = [{transform_indices = @transform_0, window_bounds = array<i64: 8, 1>}, {transform_indices = @transform_1, window_bounds = array<i64: 8, 1>}, {transform_indices = @transform_2, window_bounds = array<i64: 8, 1024>}, {transform_indices = @transform_3, window_bounds = array<i64: 8, 1024>}]} {
    %c0 = arith.constant 0 : index
    %c0_0 = arith.constant 0 : index
    %0 = vector.load %arg4[%c0, %c0_0] : memref<8x1024xf32, #tpu.memory_space<vmem>>, vector<8x1024xf32>
    %c0_1 = arith.constant 0 : index
    %c0_2 = arith.constant 0 : index
    %1 = vector.load %arg2[%c0_1, %c0_2] : memref<8x1xf32, #tpu.memory_space<vmem>>, vector<8x1xf32>
    %2 = vector.broadcast %1 : vector<8x1xf32> to vector<8x1024xf32>
    %3 = arith.mulf %0, %2 : vector<8x1024xf32>
    %c0_3 = arith.constant 0 : index
    %c0_4 = arith.constant 0 : index
    %4 = vector.load %arg3[%c0_3, %c0_4] : memref<8x1xf32, #tpu.memory_space<vmem>>, vector<8x1xf32>
    %5 = vector.broadcast %4 : vector<8x1xf32> to vector<8x1024xf32>
    %6 = arith.addf %3, %5 : vector<8x1024xf32>
    %c0_5 = arith.constant 0 : index
    %c0_6 = arith.constant 0 : index
    %7 = vector.load %arg5[%c0_5, %c0_6] : memref<8x1024xf32, #tpu.memory_space<vmem>>, vector<8x1024xf32>
    tpu.vector_store %arg5[%c0_5, %c0_6], %6 {strides = array<i32>} : memref<8x1024xf32, #tpu.memory_space<vmem>>, vector<8x1024xf32>,
    return
  }
  func.func @transform_0(%arg0: i32, %arg1: i32) -> (i32, i32) {
    %c0_i32 = arith.constant 0 : i32
    %c0_i32_0 = arith.constant 0 : i32
    return %arg0, %c0_i32 : i32, i32
  }
  func.func @transform_1(%arg0: i32, %arg1: i32) -> (i32, i32) {
    %c0_i32 = arith.constant 0 : i32
    %c0_i32_0 = arith.constant 0 : i32
    return %arg0, %c0_i32 : i32, i32
  }
  func.func @transform_2(%arg0: i32, %arg1: i32) -> (i32, i32) {
    %c0_i32 = arith.constant 0 : i32
    return %arg0, %arg1 : i32, i32
  }
  func.func @transform_3(%arg0: i32, %arg1: i32) -> (i32, i32) {
    %c0_i32 = arith.constant 0 : i32
    return %arg0, %arg1 : i32, i32
  }
}

</mosaic_0001>

<bundles_post_ra>
// kernel: tpu_custom_call.1
= control target key start
LH: loop header
LB: loop body
LE: loop exit
PB: predicated region body
PF: predicated region fallthrough
CT: control target
= control target key end

     0   :  { %8 = vsyncpa [#allocation3], 0  ;;  %s169_s0 = inlined_call_operand.vmem [shape: f32[8,1], index: 0, kind: input, shape index: {}]   ;;  %s170_s1 = inlined_call_operand.vmem [shape: f32[8,1], index: 1, kind: input, shape index: {}]   ;;  %s171_s2 = inlined_call_operand.hbm [shape: f32[6,1024], index: 2, kind: input, shape index: {}]   ;;  %s172_s3 = inlined_call_operand.hbm [shape: f32[6,1024], index: 3, kind: output, shape index: {}]  }
   0x1   :  { %9 = vsyncpa [#allocation4], 0  ;;  %s134_s12 = smov [#allocation2]  }
   0x2   :  { %s20_s13 = sshll.u32 %s134_s12, 4  ;;  %s21_s13 = int_to_ptr.vmem [resolvable:$true] %s20_s13 }
   0x3   :  { %s98_s14 = scalar_lea.vmem %s21_s13, 1024  ;;  %p103_p1 = scmp.lt.s32.totalorder %s21_s13, %s21_s13 }
   0x4   :  { %p99_p0 = scmp.ne.s32.totalorder %s21_s13, %s98_s14  ;;  %p104_p2 = scmp.lt.s32.totalorder %s98_s14, %s98_s14 }
   0x6   :  { %p105_p3 = por %p104_p2, %p103_p1 }
   0x8   :  { %p106_p4 = pnand %p105_p3, %p99_p0 }
   0xa   :  { %109 = shalt.err (!%p106_p4)
}
   0xb   :  { %23 = dma.hbm_to_vmem [thread:$0]  %s171_s2, 1024, %s21_s13, [#allocation3]  }
   0xc   :  { %130 = dma.done.wait [#allocation3], 1024  }
   0xd   :  { %131 = vsyncadd [#allocation3], 4294966272  ;;  %v135_v0 = vmov 0   ;;  %v35_v1 = vld [vmem:[%s169_s0] sm:$0xff]  ;;  %v28_v4 = vld [vmem:[#allocation2 + $0x8] sm:$0xff]  ;;  %s136_s0 = smov [#allocation5]  }
   0xe   :  { %89 = vset.pattern.permute.xlu0 %v135_v0  ;;  %v49_v2 = vld [vmem:[%s170_s1] sm:$0xff]  ;;  %v29_v6 = vld [vmem:[#allocation2 + $0x10] sm:$0xff]  ;;  %v30_v7 = vld [vmem:[#allocation2 + $0x18] sm:$0xff]  ;;  %s77_s2 = sshll.u32 %s136_s0, 4  ;;  %s78_s2 = int_to_ptr.vmem [resolvable:$true] %s77_s2 }
   0xf   :  { %38 = vperm.xlu0 %89, %v35_v1   ;;  %v27_v3 = vld [vmem:[#allocation2] sm:$0xff]  ;;  %v32_v9 = vld [vmem:[#allocation2 + $0x28] sm:$0xff]  ;;  %v33_v10 = vld [vmem:[#allocation2 + $0x30] sm:$0xff]  ;;  %s110_s1 = scalar_lea.vmem %s78_s2, 1024  ;;  %p115_p6 = scmp.lt.s32.totalorder %s78_s2, %s78_s2 }
  0x10   :  { %v31_v8 = vld [vmem:[#allocation2 + $0x20] sm:$0xff]  ;;  %v34_v11 = vld [vmem:[#allocation2 + $0x38] sm:$0xff]  ;;  %p111_p5 = scmp.ne.s32.totalorder %s78_s2, %s110_s1  ;;  %p116_p7 = scmp.lt.s32.totalorder %s110_s1, %s110_s1 }
  0x12   :  { %p117_p8 = por %p116_p7, %p115_p6 }
  0x13   :  { %52 = vperm.xlu0 %89, %v49_v2  }
  0x14   :  { %p118_p9 = pnand %p117_p8, %p111_p5 }
  0x8a   :  { %v39_v5 = vpop.permute.xlu0 %38 }
  0x8b   :  { %v41_v12 = vmul.f32 %v39_v5, %v27_v3  ;;  %v42_v13 = vmul.f32 %v39_v5, %v28_v4  ;;  %v43_v14 = vmul.f32 %v39_v5, %v29_v6  ;;  %v44_v15 = vmul.f32 %v39_v5, %v30_v7 }
  0x8c   :  { %v45_v17 = vmul.f32 %v39_v5, %v31_v8  ;;  %v46_v18 = vmul.f32 %v39_v5, %v32_v9  ;;  %v47_v19 = vmul.f32 %v39_v5, %v33_v10  ;;  %v48_v20 = vmul.f32 %v39_v5, %v34_v11 }
  0x8e   :  { %v53_v16 = vpop.permute.xlu0 %52 }
  0x8f   :  { %v55_v21 = vadd.f32 %v53_v16, %v41_v12  ;;  %v56_v22 = vadd.f32 %v53_v16, %v42_v13  ;;  %v57_v23 = vadd.f32 %v53_v16, %v43_v14  ;;  %v58_v24 = vadd.f32 %v53_v16, %v44_v15 }
  0x90   :  { %v59_v25 = vadd.f32 %v53_v16, %v45_v17  ;;  %v60_v26 = vadd.f32 %v53_v16, %v46_v18  ;;  %v61_v27 = vadd.f32 %v53_v16, %v47_v19  ;;  %v62_v28 = vadd.f32 %v53_v16, %v48_v20 }
  0x91   :  { %63 = vst [vmem:[#allocation5] sm:$0xff] %v55_v21  ;;  %64 = vst [vmem:[#allocation5 + $0x8] sm:$0xff] %v56_v22 }
  0x92   :  { %65 = vst [vmem:[#allocation5 + $0x10] sm:$0xff] %v57_v23  ;;  %66 = vst [vmem:[#allocation5 + $0x18] sm:$0xff] %v58_v24 }
  0x93   :  { %67 = vst [vmem:[#allocation5 + $0x20] sm:$0xff] %v59_v25  ;;  %68 = vst [vmem:[#allocation5 + $0x28] sm:$0xff] %v60_v26 }
  0x94   :  { %69 = vst [vmem:[#allocation5 + $0x30] sm:$0xff] %v61_v27  ;;  %70 = vst [vmem:[#allocation5 + $0x38] sm:$0xff] %v62_v28 }
  0x95   :  { %121 = shalt.err (!%p118_p9)
}
  0x96   :  { %80 = dma.vmem_to_hbm [thread:$0]  %s78_s2, 1024, %s172_s3, [#allocation4]  }
  0x97   :  { %132 = dma.done.wait [#allocation4], 1024  }
  0x98   :  { %133 = vsyncadd [#allocation4], 4294966272 }
  0x99   :  { %84 = vsyncpa [#allocation3], 1 }
  0x9a   :  { %85 = vsyncpa [#allocation4], 1 }

</bundles_post_ra>
